<compile_context>
chip_gen: v5e
topology: v5e:2x2
jax: 0.10.0
libtpu: 0.0.40
codegen_flags: <defaults>
</compile_context>

<pallas_src>
import jax
import jax.numpy as jnp
from jax.experimental import pallas as pl
from jax.experimental.pallas import tpu as pltpu

H1_PAD = 512   # 400 padded to a multiple of 128
H2_PAD = 384   # 300 padded to a multiple of 128
OUT_PAD = 128  # 1   padded to a full lane width (real output is column 0)


def critic_kernel(x_ref, u_ref, w1x_ref, w1u_ref, b1_ref, w2_ref, b2_ref,
                  w3_ref, b3_ref, o_ref):
    xb = x_ref[...].astype(jnp.bfloat16)                               # (TB, S)
    ub = u_ref[...].astype(jnp.bfloat16)                               # (TB, A)

    # c1: relu( cat([x, u]) @ W1 + b1 )  -- concat folded into two matmuls
    h1 = jnp.dot(xb, w1x_ref[...], preferred_element_type=jnp.float32)
    h1 = h1 + jnp.dot(ub, w1u_ref[...], preferred_element_type=jnp.float32)
    h1 = jnp.maximum(h1 + b1_ref[...], 0.0)                            # (TB, 512) f32

    # c2: relu( h1 @ W2 + b2 )
    h2 = jnp.dot(h1.astype(jnp.bfloat16), w2_ref[...],
                 preferred_element_type=jnp.float32)
    h2 = jnp.maximum(h2 + b2_ref[...], 0.0)                            # (TB, 384) f32

    # c3: h2 @ W3 + b3   (linear; lane-padded to OUT_PAD columns)
    q = jnp.dot(h2.astype(jnp.bfloat16), w3_ref[...],
                preferred_element_type=jnp.float32)
    o_ref[...] = (q + b3_ref[...]).astype(o_ref.dtype)                 # (TB, OUT_PAD)


def critic_forward(x, u, prepared_params, *, tile_b=256):
    """x: (B, state_dim) f32, u: (B, action_dim) f32 -> Q: (B, 1) f32."""
    w1x, w1u, b1, w2, b2, w3, b3 = prepared_params
    batch, state_dim = x.shape
    action_dim = u.shape[1]
    out_pad = w3.shape[1]

    tb = batch if batch <= tile_b else tile_b
    grid = (pl.cdiv(batch, tb),)

    def resident(shape):
        # Weights / biases: same block every grid step (stay resident in VMEM).
        return pl.BlockSpec(shape, lambda i: (0, 0))

    out = pl.pallas_call(
        critic_kernel,
        out_shape=jax.ShapeDtypeStruct((batch, out_pad), jnp.float32),
        grid=grid,
        in_specs=[
            pl.BlockSpec((tb, state_dim), lambda i: (i, 0)),   # x tile
            pl.BlockSpec((tb, action_dim), lambda i: (i, 0)),  # u tile
            resident(w1x.shape), resident(w1u.shape), resident(b1.shape),
            resident(w2.shape), resident(b2.shape),
            resident(w3.shape), resident(b3.shape),
        ],
        out_specs=pl.BlockSpec((tb, out_pad), lambda i: (i, 0)),
        compiler_params=pltpu.CompilerParams(
            dimension_semantics=("parallel",)),
    )(x, u, w1x, w1u, b1, w2, b2, w3, b3)

    return out[:, :1]


def init_critic_params(key, state_dim, action_dim):
    """PyTorch-layout params: [(W(out,in), b(out,)), ...] with Linear default init."""
    dims = [(state_dim + action_dim, 400), (400, 300), (300, 1)]
    params = []
    for fan_in, fan_out in dims:
        key, kw, kb = jax.random.split(key, 3)
        bound = float(fan_in) ** -0.5
        w = jax.random.uniform(kw, (fan_out, fan_in), jnp.float32, -bound, bound)
        b = jax.random.uniform(kb, (fan_out,), jnp.float32, -bound, bound)
        params.append((w, b))
    return params


def _pad_to(a, shape):
    return jnp.pad(a, [(0, t - s) for s, t in zip(a.shape, shape)])


def prepare_critic_params(torch_params, state_dim,
                          h1_pad=H1_PAD, h2_pad=H2_PAD, out_pad=OUT_PAD):
    """One-time transform: transpose to (in, out), split W1 into state/action
    blocks, cast weights to bf16, zero-pad every hidden/output dim to a lane
    multiple (exact through ReLU / zero rows of the next layer)."""
    (W1, B1), (W2, B2), (W3, B3) = torch_params
    w1 = W1.T                                                            # (S+A, 400)
    w1x = _pad_to(w1[:state_dim], (state_dim, h1_pad)).astype(jnp.bfloat16)
    w1u = _pad_to(w1[state_dim:], (w1.shape[0] - state_dim, h1_pad)).astype(jnp.bfloat16)
    b1 = _pad_to(B1.reshape(1, -1), (1, h1_pad)).astype(jnp.float32)     # (1, 512)

    w2 = _pad_to(W2.T, (h1_pad, h2_pad)).astype(jnp.bfloat16)            # (512, 384)
    b2 = _pad_to(B2.reshape(1, -1), (1, h2_pad)).astype(jnp.float32)     # (1, 384)

    w3 = _pad_to(W3.T, (h2_pad, out_pad)).astype(jnp.bfloat16)           # (384, 128)
    b3 = _pad_to(B3.reshape(1, -1), (1, out_pad)).astype(jnp.float32)    # (1, 128)
    return (w1x, w1u, b1, w2, b2, w3, b3)


def critic_reference(x, u, prepared_params):
    """Pure-jnp reference using the same bf16 weights / f32 accumulation."""
    w1x, w1u, b1, w2, b2, w3, b3 = prepared_params
    xb = x.astype(jnp.bfloat16)
    ub = u.astype(jnp.bfloat16)
    h1 = jnp.maximum(
        jnp.dot(xb, w1x, preferred_element_type=jnp.float32)
        + jnp.dot(ub, w1u, preferred_element_type=jnp.float32) + b1, 0.0)
    h2 = jnp.maximum(
        jnp.dot(h1.astype(jnp.bfloat16), w2,
                preferred_element_type=jnp.float32) + b2, 0.0)
    q = jnp.dot(h2.astype(jnp.bfloat16), w3,
                preferred_element_type=jnp.float32) + b3
    return q[:, :1]


if __name__ == "__main__":
    # Small, gym-plausible shapes: state_dim=16, action_dim=4, batch=8.
    state_dim, action_dim, batch = 16, 4, 8

    key = jax.random.PRNGKey(0)
    key, kx, ku = jax.random.split(key, 3)
    x = jax.random.normal(kx, (batch, state_dim), jnp.float32)
    u = jax.random.normal(ku, (batch, action_dim), jnp.float32)

    torch_params = init_critic_params(key, state_dim, action_dim)
    prepared = prepare_critic_params(torch_params, state_dim)

    q = critic_forward(x, u, prepared)
    q = jax.block_until_ready(q)

    ref = critic_reference(x, u, prepared)
    assert q.shape == (batch, 1), q.shape
    assert jnp.allclose(q, ref, atol=1e-2, rtol=1e-2), "mismatch vs reference"

    print("KERNEL_OK")
</pallas_src>

<mosaic_0001>
module attributes {stable_mosaic.version = 11 : i64} {
  func.func @critic_kernel(%arg0: i32, %arg1: memref<8x16xf32, #tpu.memory_space<vmem>>, %arg2: memref<8x4xf32, #tpu.memory_space<vmem>>, %arg3: memref<16x512xbf16, #tpu.memory_space<vmem>>, %arg4: memref<4x512xbf16, #tpu.memory_space<vmem>>, %arg5: memref<1x512xf32, #tpu.memory_space<vmem>>, %arg6: memref<512x384xbf16, #tpu.memory_space<vmem>>, %arg7: memref<1x384xf32, #tpu.memory_space<vmem>>, %arg8: memref<384x128xbf16, #tpu.memory_space<vmem>>, %arg9: memref<1x128xf32, #tpu.memory_space<vmem>>, %arg10: memref<8x128xf32, #tpu.memory_space<vmem>>) attributes {dimension_semantics = [#tpu.dimension_semantics<parallel>], iteration_bounds = array<i64: 1>, scalar_prefetch = 0 : i64, scratch_operands = 0 : i64, tpu.core_type = #tpu.core_type<tc>, window_params = [{transform_indices = @transform_0, window_bounds = array<i64: 8, 16>}, {transform_indices = @transform_1, window_bounds = array<i64: 8, 4>}, {pipeline_mode = #tpu.pipeline_mode<synchronous>, transform_indices = @transform_2, window_bounds = array<i64: 16, 512>}, {pipeline_mode = #tpu.pipeline_mode<synchronous>, transform_indices = @transform_3, window_bounds = array<i64: 4, 512>}, {pipeline_mode = #tpu.pipeline_mode<synchronous>, transform_indices = @transform_4, window_bounds = array<i64: 1, 512>}, {pipeline_mode = #tpu.pipeline_mode<synchronous>, transform_indices = @transform_5, window_bounds = array<i64: 512, 384>}, {pipeline_mode = #tpu.pipeline_mode<synchronous>, transform_indices = @transform_6, window_bounds = array<i64: 1, 384>}, {pipeline_mode = #tpu.pipeline_mode<synchronous>, transform_indices = @transform_7, window_bounds = array<i64: 384, 128>}, {pipeline_mode = #tpu.pipeline_mode<synchronous>, transform_indices = @transform_8, window_bounds = array<i64: 1, 128>}, {transform_indices = @transform_9, window_bounds = array<i64: 8, 128>}]} {
    %c0 = arith.constant 0 : index
    %c0_0 = arith.constant 0 : index
    %0 = vector.load %arg1[%c0, %c0_0] : memref<8x16xf32, #tpu.memory_space<vmem>>, vector<8x16xf32>
    %1 = arith.truncf %0 : vector<8x16xf32> to vector<8x16xbf16>
    %c0_1 = arith.constant 0 : index
    %c0_2 = arith.constant 0 : index
    %2 = vector.load %arg2[%c0_1, %c0_2] : memref<8x4xf32, #tpu.memory_space<vmem>>, vector<8x4xf32>
    %3 = arith.truncf %2 : vector<8x4xf32> to vector<8x4xbf16>
    %c0_3 = arith.constant 0 : index
    %c0_4 = arith.constant 0 : index
    %4 = vector.load %arg3[%c0_3, %c0_4] : memref<16x512xbf16, #tpu.memory_space<vmem>>, vector<16x512xbf16>
    %cst = arith.constant dense<0.000000e+00> : vector<8x512xf32>
    %5 = tpu.matmul %1, %4, %cst {dimension_numbers = #tpu.dot_dimension_numbers<[1], [0], [0], [1], [0, 0, 1, 1], [], []>} : vector<8x16xbf16>, vector<16x512xbf16>, vector<8x512xf32> -> vector<8x512xf32>
    %c0_5 = arith.constant 0 : index
    %c0_6 = arith.constant 0 : index
    %6 = vector.load %arg4[%c0_5, %c0_6] : memref<4x512xbf16, #tpu.memory_space<vmem>>, vector<4x512xbf16>
    %cst_7 = arith.constant dense<0.000000e+00> : vector<8x512xf32>
    %7 = tpu.matmul %3, %6, %cst_7 {dimension_numbers = #tpu.dot_dimension_numbers<[1], [0], [0], [1], [0, 0, 1, 1], [], []>} : vector<8x4xbf16>, vector<4x512xbf16>, vector<8x512xf32> -> vector<8x512xf32>
    %8 = arith.addf %5, %7 : vector<8x512xf32>
    %c0_8 = arith.constant 0 : index
    %c0_9 = arith.constant 0 : index
    %9 = vector.load %arg5[%c0_8, %c0_9] : memref<1x512xf32, #tpu.memory_space<vmem>>, vector<1x512xf32>
    %10 = vector.broadcast %9 : vector<1x512xf32> to vector<8x512xf32>
    %11 = arith.addf %8, %10 : vector<8x512xf32>
    %cst_10 = arith.constant 0.000000e+00 : f32
    %12 = vector.broadcast %cst_10 : f32 to vector<8x512xf32>
    %13 = arith.maximumf %11, %12 : vector<8x512xf32>
    %14 = arith.truncf %13 : vector<8x512xf32> to vector<8x512xbf16>
    %c0_11 = arith.constant 0 : index
    %c0_12 = arith.constant 0 : index
    %15 = vector.load %arg6[%c0_11, %c0_12] : memref<512x384xbf16, #tpu.memory_space<vmem>>, vector<512x384xbf16>
    %cst_13 = arith.constant dense<0.000000e+00> : vector<8x384xf32>
    %16 = tpu.matmul %14, %15, %cst_13 {dimension_numbers = #tpu.dot_dimension_numbers<[1], [0], [0], [1], [0, 0, 1, 1], [], []>} : vector<8x512xbf16>, vector<512x384xbf16>, vector<8x384xf32> -> vector<8x384xf32>
    %c0_14 = arith.constant 0 : index
    %c0_15 = arith.constant 0 : index
    %17 = vector.load %arg7[%c0_14, %c0_15] : memref<1x384xf32, #tpu.memory_space<vmem>>, vector<1x384xf32>
    %18 = vector.broadcast %17 : vector<1x384xf32> to vector<8x384xf32>
    %19 = arith.addf %16, %18 : vector<8x384xf32>
    %cst_16 = arith.constant 0.000000e+00 : f32
    %20 = vector.broadcast %cst_16 : f32 to vector<8x384xf32>
    %21 = arith.maximumf %19, %20 : vector<8x384xf32>
    %22 = arith.truncf %21 : vector<8x384xf32> to vector<8x384xbf16>
    %c0_17 = arith.constant 0 : index
    %c0_18 = arith.constant 0 : index
    %23 = vector.load %arg8[%c0_17, %c0_18] : memref<384x128xbf16, #tpu.memory_space<vmem>>, vector<384x128xbf16>
    %cst_19 = arith.constant dense<0.000000e+00> : vector<8x128xf32>
    %24 = tpu.matmul %22, %23, %cst_19 {dimension_numbers = #tpu.dot_dimension_numbers<[1], [0], [0], [1], [0, 0, 1, 1], [], []>} : vector<8x384xbf16>, vector<384x128xbf16>, vector<8x128xf32> -> vector<8x128xf32>
    %c0_20 = arith.constant 0 : index
    %c0_21 = arith.constant 0 : index
    %25 = vector.load %arg9[%c0_20, %c0_21] : memref<1x128xf32, #tpu.memory_space<vmem>>, vector<1x128xf32>
    %26 = vector.broadcast %25 : vector<1x128xf32> to vector<8x128xf32>
    %27 = arith.addf %24, %26 : vector<8x128xf32>
    %c0_22 = arith.constant 0 : index
    %c0_23 = arith.constant 0 : index
    %28 = vector.load %arg10[%c0_22, %c0_23] : memref<8x128xf32, #tpu.memory_space<vmem>>, vector<8x128xf32>
    tpu.vector_store %arg10[%c0_22, %c0_23], %27 {strides = array<i32>} : memref<8x128xf32, #tpu.memory_space<vmem>>, vector<8x128xf32>,
    return
  }
  func.func @transform_0(%arg0: i32) -> (i32, i32) {
    %c0_i32 = arith.constant 0 : i32
    %c0_i32_0 = arith.constant 0 : i32
    return %arg0, %c0_i32 : i32, i32
  }
  func.func @transform_1(%arg0: i32) -> (i32, i32) {
    %c0_i32 = arith.constant 0 : i32
    %c0_i32_0 = arith.constant 0 : i32
    return %arg0, %c0_i32 : i32, i32
  }
  func.func @transform_2(%arg0: i32) -> (i32, i32) {
    %c0_i32 = arith.constant 0 : i32
    %c0_i32_0 = arith.constant 0 : i32
    %c0_i32_1 = arith.constant 0 : i32
    return %c0_i32, %c0_i32_0 : i32, i32
  }
  func.func @transform_3(%arg0: i32) -> (i32, i32) {
    %c0_i32 = arith.constant 0 : i32
    %c0_i32_0 = arith.constant 0 : i32
    %c0_i32_1 = arith.constant 0 : i32
    return %c0_i32, %c0_i32_0 : i32, i32
  }
  func.func @transform_4(%arg0: i32) -> (i32, i32) {
    %c0_i32 = arith.constant 0 : i32
    %c0_i32_0 = arith.constant 0 : i32
    %c0_i32_1 = arith.constant 0 : i32
    return %c0_i32, %c0_i32_0 : i32, i32
  }
  func.func @transform_5(%arg0: i32) -> (i32, i32) {
    %c0_i32 = arith.constant 0 : i32
    %c0_i32_0 = arith.constant 0 : i32
    %c0_i32_1 = arith.constant 0 : i32
    return %c0_i32, %c0_i32_0 : i32, i32
  }
  func.func @transform_6(%arg0: i32) -> (i32, i32) {
    %c0_i32 = arith.constant 0 : i32
    %c0_i32_0 = arith.constant 0 : i32
    %c0_i32_1 = arith.constant 0 : i32
    return %c0_i32, %c0_i32_0 : i32, i32
  }
  func.func @transform_7(%arg0: i32) -> (i32, i32) {
    %c0_i32 = arith.constant 0 : i32
    %c0_i32_0 = arith.constant 0 : i32
    %c0_i32_1 = arith.constant 0 : i32
    return %c0_i32, %c0_i32_0 : i32, i32
  }
  func.func @transform_8(%arg0: i32) -> (i32, i32) {
    %c0_i32 = arith.constant 0 : i32
    %c0_i32_0 = arith.constant 0 : i32
    %c0_i32_1 = arith.constant 0 : i32
    return %c0_i32, %c0_i32_0 : i32, i32
  }
  func.func @transform_9(%arg0: i32) -> (i32, i32) {
    %c0_i32 = arith.constant 0 : i32
    %c0_i32_0 = arith.constant 0 : i32
    return %arg0, %c0_i32 : i32, i32
  }
}

</mosaic_0001>

<bundles_post_ra>
// kernel: tpu_custom_call.1
= control target key start
LH: loop header
LB: loop body
LE: loop exit
PB: predicated region body
PF: predicated region fallthrough
CT: control target
= control target key end

     0   :  { %14 = vsyncpa [#allocation3], 0  ;;  %s2242_s0 = inlined_call_operand.vmem [shape: f32[8,16], index: 0, kind: input, shape index: {}]   ;;  %s2243_s1 = inlined_call_operand.vmem [shape: f32[8,4], index: 1, kind: input, shape index: {}]   ;;  %s2244_s2 = inlined_call_operand.hbm [shape: bf16[16,512], index: 2, kind: input, shape index: {}]   ;;  %s2245_s3 = inlined_call_operand.hbm [shape: bf16[4,512], index: 3, kind: input, shape index: {}]   ;;  %s2246_s4 = inlined_call_operand.vmem [shape: f32[1,512], index: 4, kind: input, shape index: {}]   ;;  %s2247_s5 = inlined_call_operand.hbm [shape: bf16[512,384], index: 5, kind: input, shape index: {}]   ;;  %s2248_s6 = inlined_call_operand.vmem [shape: f32[1,384], index: 6, kind: input, shape index: {}]   ;;  %s2249_s7 = inlined_call_operand.hbm [shape: bf16[384,128], index: 7, kind: input, shape index: {}]   ;;  %s2250_s8 = inlined_call_operand.vmem [shape: f32[1,128], index: 8, kind: input, shape index: {}]   ;;  %s2251_s9 = inlined_call_operand.hbm [shape: f32[8,128], index: 9, kind: output, shape index: {}]  }
   0x1   :  { %15 = vsyncpa [#allocation6], 0 }
   0x2   :  { %16 = vsyncpa [#allocation9], 0  ;;  %s40_s11 = sshll.u32 %s2245_s3, 4  ;;  %s41_s11 = int_to_ptr.hbm [resolvable:$true] %s40_s11 }
   0x3   :  { %17 = vsyncpa [#allocation4], 0  ;;  %s2106_s12 = smov [#allocation5]   ;;  %s26_s16 = sshll.u32 %s2244_s2, 4  ;;  %s27_s16 = int_to_ptr.hbm [resolvable:$true] %s26_s16 }
   0x4   :  { %s42_s13 = sshll.u32 %s2106_s12, 4  ;;  %s2107_s17 = smov [#allocation2]   ;;  %s43_s13 = int_to_ptr.vmem [resolvable:$true] %s42_s13 }
   0x5   :  { %45 = dma.hbm_to_vmem [thread:$0]  %s41_s11, 128, %s43_s13, [#allocation6]  }
   0x6   :  { %s28_s18 = sshll.u32 %s2107_s17, 4  ;;  %s2108_s19 = smov 256   ;;  %s29_s18 = int_to_ptr.vmem [resolvable:$true] %s28_s18 }
   0x7   :  { %s2109_s20 = smov 16   ;;  %s52_s3 = sshll.u32 %s2247_s5, 4  ;;  %s53_s3 = int_to_ptr.hbm [resolvable:$true] %s52_s3 }
   0x8   :  { %34 = dma.hbm_to_vmem [thread:$0]  %s27_s16, 512, %s29_s18, [#allocation3], %s2108_s19, %s2108_s19, %s2109_s20  }
   0x9   :  { %s2110_s23 = smov [#allocation7]   ;;  %s67_s2 = sshll.u32 %s2249_s7, 4  ;;  %s68_s2 = int_to_ptr.hbm [resolvable:$true] %s67_s2 }
   0xa   :  { %s54_s24 = sshll.u32 %s2110_s23, 4  ;;  %s2111_s27 = smov 192   ;;  %s55_s24 = int_to_ptr.vmem [resolvable:$true] %s54_s24 }
   0xb   :  { %s2112_s28 = smov 12   ;;  %s2113_s29 = smov [#allocation8]  }
   0xc   :  { %60 = dma.hbm_to_vmem [thread:$0]  %s53_s3, 12288, %s55_s24, [#allocation6], %s2111_s27, %s2111_s27, %s2112_s28  }
   0xd   :  { %s69_s30 = sshll.u32 %s2113_s29, 4  ;;  %s2114_s10 = smov 64   ;;  %s70_s30 = int_to_ptr.vmem [resolvable:$true] %s69_s30 }
   0xe   :  { %s2115_s11 = smov 4  }
   0xf   :  { %75 = dma.hbm_to_vmem [thread:$0]  %s68_s2, 3072, %s70_s30, [#allocation9], %s2114_s10, %s2114_s10, %s2115_s11  }
  0x10   :  { %2098 = dma.done.wait [#allocation3], 512  }
  0x11   :  { %2099 = vsyncadd [#allocation3], 4294966784 }
  0x12   :  { %2100 = dma.done.wait [#allocation6], 12416  }
  0x13   :  { %2101 = vsyncadd [#allocation6], 4294954880 }
  0x14   :  { %2102 = dma.done.wait [#allocation9], 3072  }
  0x15   :  { %2103 = vsyncadd [#allocation9], 4294964224  ;;  %v103_v0 = vld [vmem:[#allocation5] sm:$0xff]  ;;  %v1844_v2 = vld [vmem:[#allocation2 + $0xc] sm:$0xf0]  ;;  %vm195_vm0 = vcmask 130048  }
  0x16   :  { %v1344_v1 = vld [vmem:[#allocation2] sm:$0xf]  ;;  %105 = vst [vmem:[#allocation1] ss:$4 sm:$0xff] %v103_v0  ;;  %v95_v3 = vld [vmem:[%s2242_s0] sm:$0xff]  ;;  %vm114_vm1 = vcmask 1041408  }
  0x17   :  { %v1345_v4 = vor.u32 %v1844_v2, %v1344_v1  ;;  %v2182_v5 = vpack.c.bf16 %v95_v3, %v95_v3  ;;  %v1842_v6 = vld [vmem:[#allocation2 + $0x4] sm:$0xf]  ;;  %v1346_v7 = vld [vmem:[#allocation2 + $0x10] sm:$0xf0]  ;;  %v1352_v8 = vld [vmem:[#allocation2 + $0x8] sm:$0xf] }
  0x18   :  { %v1845_v9 = vld [vmem:[#allocation2 + $0x14] sm:$0xf0]  ;;  %v1349_v11 = vor.u32 %v1842_v6, %v1346_v7  ;;  %v1843_v12 = vld [vmem:[#allocation2 + $0xc] sm:$0xf]  ;;  %v1354_v13 = vld [vmem:[#allocation2 + $0x18] sm:$0xf0] }
  0x19   :  { %206 = vmatpush.bf16.msra.mxu0 %v1345_v4  ;;  %v97_v10 = vld [vmem:[%s2243_s1] sm:$0xff]  ;;  %v1353_v16 = vor.u32 %v1845_v9, %v1352_v8  ;;  %vm110_vm2 = vcmask 31744   ;;  %v1357_v23 = vor.u32 %v1843_v12, %v1354_v13  ;;  %v1448_v25 = vld [vmem:[#allocation7 + $0xa8] sm:$0xf]  ;;  %v1865_v29 = vld [vmem:[#allocation7 + $0x98] sm:$0xf0] }
  0x1a   :  { %v2191_v20 = vpack.c.bf16 %v97_v10, %v97_v10  ;;  %v1868_v26 = vld [vmem:[#allocation7 + $0xb0] sm:$0xf0]  ;;  %v1436_v27 = vld [vmem:[#allocation7 + $0x90] sm:$0xf]  ;;  %v1544_v30 = vld [vmem:[#allocation7 + $0x168] sm:$0xf] }
  0x1b   :  { %v1449_v28 = vor.u32 %v1868_v26, %v1448_v25  ;;  %v1892_v31 = vld [vmem:[#allocation7 + $0x170] sm:$0xf0]  ;;  %v1437_v32 = vor.u32 %v1865_v29, %v1436_v27  ;;  %v1532_v34 = vld [vmem:[#allocation7 + $0x150] sm:$0xf]  ;;  %v1889_v35 = vld [vmem:[#allocation7 + $0x158] sm:$0xf0] }
  0x1c   :  { %1358 = vmatmul.msk.bf16.vlgmr.msra.gmra.mxu0 %vm195_vm0, %v2182_v5  ;;  %v1545_v33 = vor.u32 %v1892_v31, %v1544_v30  ;;  %v1424_v36 = vld [vmem:[#allocation7 + $0x78] sm:$0xf]  ;;  %v1862_v37 = vld [vmem:[#allocation7 + $0x80] sm:$0xf0]  ;;  %v1640_v38 = vld [vmem:[#allocation7 + $0x228] sm:$0xf]  ;;  %v1533_v39 = vor.u32 %v1889_v35, %v1532_v34 }
  0x1d   :  { %v106_v14 = vld.sshfl [vmem:[#allocation1] sm:$0xff pattern:$0x73625140]  ;;  %v107_v15 = vld.sshfl [vmem:[#allocation1 + $0x8] sm:$0xff pattern:$0x73625140]  ;;  %921 = vmatpush.bf16.msrb.mxu0 %v1449_v28  ;;  %v1425_v45 = vor.u32 %v1862_v37, %v1424_v36 }
  0x1e   :  { %v115_v17 = vsel %vm114_vm1, %v106_v14, 0  ;;  %v117_v18 = vsel %vm114_vm1, %v107_v15, 0  ;;  %v108_v19 = vld.sshfl [vmem:[#allocation1 + $0x10] sm:$0xff pattern:$0x73625140]  ;;  %s2116_s16 = smov [#allocation10]  }
  0x1f   :  { %130 = vmatpush.bf16.msra.mxu3 %v115_v17  ;;  %143 = vmatpush.bf16.msra.mxu1 %v117_v18  ;;  %v119_v21 = vsel %vm114_vm1, %v108_v19, 0  ;;  %v109_v22 = vld.sshfl [vmem:[#allocation1 + $0x18] sm:$0xff pattern:$0x73625140]  ;;  %v1916_v40 = vld [vmem:[#allocation7 + $0x230] sm:$0xf0] }
  0x20   :  { %156 = vmatpush.bf16.msra.mxu2 %v119_v21  ;;  %v121_v24 = vsel %vm114_vm1, %v109_v22, 0  ;;  %v1641_v41 = vor.u32 %v1916_v40, %v1640_v38  ;;  %v1520_v42 = vld [vmem:[#allocation7 + $0x138] sm:$0xf]  ;;  %v1886_v43 = vld [vmem:[#allocation7 + $0x140] sm:$0xf0]  ;;  %s1324_s17 = sshll.u32 %s2116_s16, 4  ;;  %s1325_s17 = int_to_ptr.vmem [resolvable:$true] %s1324_s17 }
  0x21   :  { %v1628_v44 = vld [vmem:[#allocation7 + $0x210] sm:$0xf]  ;;  %922 = vmatpush.bf16.msrb.mxu0 %v1437_v32  ;;  %v1913_v46 = vld [vmem:[#allocation7 + $0x218] sm:$0xf0]  ;;  %v1412_v47 = vld [vmem:[#allocation7 + $0x60] sm:$0xf]  ;;  %v1521_v50 = vor.u32 %v1886_v43, %v1520_v42 }
  0x22   :  { %1338 = vmatmul.msk.bf16.vlgmr.msra.gmra.mxu3 %vm110_vm2, %v2191_v20  ;;  %1339 = vmatmul.msk.bf16.vlgmr.msra.gmra.mxu1 %vm110_vm2, %v2191_v20  ;;  %v1859_v48 = vld [vmem:[#allocation7 + $0x68] sm:$0xf0]  ;;  %v1629_v49 = vor.u32 %v1913_v46, %v1628_v44  ;;  %v1508_v51 = vld [vmem:[#allocation7 + $0x120] sm:$0xf]  ;;  %v1616_v54 = vld [vmem:[#allocation7 + $0x1f8] sm:$0xf] }
  0x23   :  { %219 = vmatpush.bf16.msrb.mxu1 %v1349_v11  ;;  %169 = vmatpush.bf16.msrb.mxu3 %v121_v24  ;;  %v1883_v52 = vld [vmem:[#allocation7 + $0x128] sm:$0xf0]  ;;  %v1413_v53 = vor.u32 %v1859_v48, %v1412_v47  ;;  %v1910_v55 = vld [vmem:[#allocation7 + $0x200] sm:$0xf0]  ;;  %v1400_v56 = vld [vmem:[#allocation7 + $0x48] sm:$0xf] }
  0x24   :  { %232 = vmatpush.bf16.msrb.mxu2 %v1353_v16  ;;  %v1856_v57 = vld [vmem:[#allocation7 + $0x50] sm:$0xf0]  ;;  %v1509_v58 = vor.u32 %v1883_v52, %v1508_v51  ;;  %v1736_v59 = vld [vmem:[#allocation7 + $0x2e8] sm:$0xf]  ;;  %v1617_v61 = vor.u32 %v1910_v55, %v1616_v54  ;;  %v1388_v2 = vld [vmem:[#allocation7 + $0x30] sm:$0xf] }
  0x25   :  { %1340 = vmatmul.msk.bf16.vlgmr.msra.gmra.mxu2 %vm110_vm2, %v2191_v20  ;;  %923 = vmatpush.bf16.msrb.mxu0 %v1425_v45  ;;  %v1940_v60 = vld [vmem:[#allocation7 + $0x2f0] sm:$0xf0]  ;;  %v1496_v62 = vld [vmem:[#allocation7 + $0x108] sm:$0xf]  ;;  %v1401_v1 = vor.u32 %v1856_v57, %v1400_v56  ;;  %v1604_v3 = vld [vmem:[#allocation7 + $0x1e0] sm:$0xf] }
  0x26   :  { %v1880_v63 = vld [vmem:[#allocation7 + $0x110] sm:$0xf0]  ;;  %v1737_v0 = vor.u32 %v1940_v60, %v1736_v59  ;;  %v1907_v4 = vld [vmem:[#allocation7 + $0x1e8] sm:$0xf0]  ;;  %v1853_v6 = vld [vmem:[#allocation7 + $0x38] sm:$0xf0] }
  0x27   :  { %245 = vmatpush.bf16.msra.mxu3 %v1357_v23  ;;  %934 = vmatpush.bf16.msra.mxu1 %v1545_v33  ;;  %v1724_v7 = vld [vmem:[#allocation7 + $0x2d0] sm:$0xf]  ;;  %v1937_v8 = vld [vmem:[#allocation7 + $0x2d8] sm:$0xf0]  ;;  %v1497_v9 = vor.u32 %v1880_v63, %v1496_v62  ;;  %v1605_v10 = vor.u32 %v1907_v4, %v1604_v3  ;;  %v1592_v13 = vld [vmem:[#allocation7 + $0x1c8] sm:$0xf]  ;;  %v1389_v15 = vor.u32 %v1853_v6, %v1388_v2 }
  0x28   :  { %947 = vmatpush.bf16.msra.mxu2 %v1641_v41  ;;  %v1484_v11 = vld [vmem:[#allocation7 + $0xf0] sm:$0xf]  ;;  %v1877_v12 = vld [vmem:[#allocation7 + $0xf8] sm:$0xf0]  ;;  %v1725_v14 = vor.u32 %v1937_v8, %v1724_v7  ;;  %v1904_v16 = vld [vmem:[#allocation7 + $0x1d0] sm:$0xf0] }
  0x29   :  { %924 = vmatpush.bf16.msrb.mxu0 %v1413_v53  ;;  %v1712_v17 = vld [vmem:[#allocation7 + $0x2b8] sm:$0xf]  ;;  %v1934_v18 = vld [vmem:[#allocation7 + $0x2c0] sm:$0xf0]  ;;  %v1485_v21 = vor.u32 %v1877_v12, %v1484_v11  ;;  %v1593_v22 = vor.u32 %v1904_v16, %v1592_v13  ;;  %v1580_v27 = vld [vmem:[#allocation7 + $0x1b0] sm:$0xf] }
  0x2a   :  { %v1376_v19 = vld [vmem:[#allocation7 + $0x18] sm:$0xf]  ;;  %v1874_v24 = vld [vmem:[#allocation7 + $0xe0] sm:$0xf0]  ;;  %v1713_v25 = vor.u32 %v1934_v18, %v1712_v17  ;;  %v1901_v28 = vld [vmem:[#allocation7 + $0x1b8] sm:$0xf0] }
  0x2b   :  { %935 = vmatpush.bf16.msra.mxu1 %v1533_v39  ;;  %v1472_v23 = vld [vmem:[#allocation7 + $0xd8] sm:$0xf]  ;;  %v1364_v29 = vld [vmem:[#allocation7] sm:$0xf]  ;;  %v1847_v30 = vld [vmem:[#allocation7 + $0x8] sm:$0xf0]  ;;  %v1581_v34 = vor.u32 %v1901_v28, %v1580_v27 }
  0x2c   :  { %948 = vmatpush.bf16.msra.mxu2 %v1629_v49  ;;  %v1867_v31 = vld [vmem:[#allocation7 + $0xac] sm:$0xf]  ;;  %v1450_v32 = vld [vmem:[#allocation7 + $0xb4] sm:$0xf0]  ;;  %v1473_v33 = vor.u32 %v1874_v24, %v1472_v23  ;;  %v1460_v35 = vld [vmem:[#allocation7 + $0xc0] sm:$0xf]  ;;  %v1365_v38 = vor.u32 %v1847_v30, %v1364_v29 }
  0x2d   :  { %925 = vmatpush.bf16.msrb.mxu0 %v1401_v1  ;;  %v1871_v36 = vld [vmem:[#allocation7 + $0xc8] sm:$0xf0]  ;;  %v1546_v39 = vld [vmem:[#allocation7 + $0x174] sm:$0xf0]  ;;  %v1898_v41 = vld [vmem:[#allocation7 + $0x1a0] sm:$0xf0]  ;;  %v1453_v42 = vor.u32 %v1867_v31, %v1450_v32 }
  0x2e   :  { %v1891_v37 = vld [vmem:[#allocation7 + $0x16c] sm:$0xf]  ;;  %v1568_v40 = vld [vmem:[#allocation7 + $0x198] sm:$0xf]  ;;  %v1864_v43 = vld [vmem:[#allocation7 + $0x94] sm:$0xf]  ;;  %v1461_v45 = vor.u32 %v1871_v36, %v1460_v35 }
  0x2f   :  { %936 = vmatpush.bf16.msra.mxu1 %v1521_v50  ;;  %v1438_v44 = vld [vmem:[#allocation7 + $0x9c] sm:$0xf0]  ;;  %v1549_v46 = vor.u32 %v1891_v37, %v1546_v39  ;;  %v1569_v47 = vor.u32 %v1898_v41, %v1568_v40  ;;  %v1861_v49 = vld [vmem:[#allocation7 + $0x7c] sm:$0xf]  ;;  %v1426_v50 = vld [vmem:[#allocation7 + $0x84] sm:$0xf0] }
  0x30   :  { %949 = vmatpush.bf16.msra.mxu2 %v1617_v61  ;;  %v1441_v48 = vor.u32 %v1864_v43, %v1438_v44  ;;  %v1429_v51 = vor.u32 %v1861_v49, %v1426_v50  ;;  %v1858_v52 = vld [vmem:[#allocation7 + $0x64] sm:$0xf]  ;;  %v1414_v53 = vld [vmem:[#allocation7 + $0x6c] sm:$0xf0]  ;;  %v1888_v55 = vld [vmem:[#allocation7 + $0x154] sm:$0xf] }
  0x31   :  { %926 = vmatpush.bf16.msrb.mxu0 %v1389_v15  ;;  %v1417_v54 = vor.u32 %v1858_v52, %v1414_v53  ;;  %v1534_v56 = vld [vmem:[#allocation7 + $0x15c] sm:$0xf0]  ;;  %v1895_v59 = vld [vmem:[#allocation7 + $0x188] sm:$0xf0]  ;;  %v1402_v63 = vld [vmem:[#allocation7 + $0x54] sm:$0xf0] }
  0x32   :  { %1341 = vmatmul.msk.bf16.vlgmr.msrb.gmra.mxu3 %vm110_vm2, %v2191_v20  ;;  %1359 = vmatmul.msk.bf16.vlgmr.msrb.gmra.mxu1 %vm195_vm0, %v2182_v5  ;;  %v1850_v20 = vld [vmem:[#allocation7 + $0x20] sm:$0xf0]  ;;  %v1537_v57 = vor.u32 %v1888_v55, %v1534_v56  ;;  %v1931_v61 = vld [vmem:[#allocation7 + $0x2a8] sm:$0xf0]  ;;  %v1642_v3 = vld [vmem:[#allocation7 + $0x234] sm:$0xf0] }
  0x33   :  { %937 = vmatpush.bf16.msra.mxu1 %v1509_v58  ;;  %960 = vmatpush.bf16.msrb.mxu3 %v1737_v0  ;;  %v1377_v26 = vor.u32 %v1850_v20, %v1376_v19  ;;  %v1556_v58 = vld [vmem:[#allocation7 + $0x180] sm:$0xf]  ;;  %v1855_v62 = vld [vmem:[#allocation7 + $0x4c] sm:$0xf]  ;;  %v1885_v4 = vld [vmem:[#allocation7 + $0x13c] sm:$0xf] }
  0x34   :  { %950 = vmatpush.bf16.msra.mxu2 %v1605_v10  ;;  %v1557_v60 = vor.u32 %v1895_v59, %v1556_v58  ;;  %v1405_v1 = vor.u32 %v1855_v62, %v1402_v63  ;;  %v1915_v2 = vld [vmem:[#allocation7 + $0x22c] sm:$0xf]  ;;  %v1522_v7 = vld [vmem:[#allocation7 + $0x144] sm:$0xf0]  ;;  %v1928_v10 = vld [vmem:[#allocation7 + $0x290] sm:$0xf0] }
  0x35   :  { %1360 = vmatmul.msk.bf16.vlgmr.msrb.gmra.mxu2 %vm195_vm0, %v2182_v5  ;;  %927 = vmatpush.bf16.msrb.mxu0 %v1377_v26  ;;  %v1645_v6 = vor.u32 %v1915_v2, %v1642_v3  ;;  %v1525_v8 = vor.u32 %v1885_v4, %v1522_v7  ;;  %v1852_v12 = vld [vmem:[#allocation7 + $0x34] sm:$0xf]  ;;  %v1390_v13 = vld [vmem:[#allocation7 + $0x3c] sm:$0xf0]  ;;  %v1882_v18 = vld [vmem:[#allocation7 + $0x124] sm:$0xf] }
  0x36   :  { %v1393_v15 = vor.u32 %v1852_v12, %v1390_v13  ;;  %v1630_v16 = vld [vmem:[#allocation7 + $0x21c] sm:$0xf0]  ;;  %v1510_v19 = vld [vmem:[#allocation7 + $0x12c] sm:$0xf0]  ;;  %v1849_v24 = vld [vmem:[#allocation7 + $0x1c] sm:$0xf] }
  0x37   :  { %938 = vmatpush.bf16.msra.mxu1 %v1497_v9  ;;  %961 = vmatpush.bf16.msrb.mxu3 %v1725_v14  ;;  %v1688_v9 = vld [vmem:[#allocation7 + $0x288] sm:$0xf]  ;;  %v1912_v14 = vld [vmem:[#allocation7 + $0x214] sm:$0xf]  ;;  %v1513_v20 = vor.u32 %v1882_v18, %v1510_v19  ;;  %v1909_v26 = vld [vmem:[#allocation7 + $0x1fc] sm:$0xf] }
  0x38   :  { %951 = vmatpush.bf16.msra.mxu2 %v1593_v22  ;;  %v1689_v11 = vor.u32 %v1928_v10, %v1688_v9  ;;  %v1633_v17 = vor.u32 %v1912_v14, %v1630_v16  ;;  %v1925_v22 = vld [vmem:[#allocation7 + $0x278] sm:$0xf0]  ;;  %v1618_v28 = vld [vmem:[#allocation7 + $0x204] sm:$0xf0]  ;;  %v1879_v30 = vld [vmem:[#allocation7 + $0x10c] sm:$0xf] }
  0x39   :  { %928 = vmatpush.bf16.msrb.mxu0 %v1365_v38  ;;  %v1621_v29 = vor.u32 %v1909_v26, %v1618_v28  ;;  %v1498_v31 = vld [vmem:[#allocation7 + $0x114] sm:$0xf0]  ;;  %v1846_v36 = vld [vmem:[#allocation7 + $0x4] sm:$0xf]  ;;  %v1366_v37 = vld [vmem:[#allocation7 + $0xc] sm:$0xf0] }
  0x3a   :  { %v1501_v32 = vor.u32 %v1879_v30, %v1498_v31  ;;  %v1906_v38 = vld [vmem:[#allocation7 + $0x1e4] sm:$0xf]  ;;  %v1369_v39 = vor.u32 %v1846_v36, %v1366_v37  ;;  %v1606_v40 = vld [vmem:[#allocation7 + $0x1ec] sm:$0xf0]  ;;  %v1486_v43 = vld [vmem:[#allocation7 + $0xfc] sm:$0xf0] }
  0x3b   :  { %939 = vmatpush.bf16.msra.mxu1 %v1485_v21  ;;  %962 = vmatpush.bf16.msrb.mxu3 %v1713_v25  ;;  %v1676_v21 = vld [vmem:[#allocation7 + $0x270] sm:$0xf]  ;;  %v1378_v25 = vld [vmem:[#allocation7 + $0x24] sm:$0xf0]  ;;  %v1609_v41 = vor.u32 %v1906_v38, %v1606_v40  ;;  %v1594_v49 = vld [vmem:[#allocation7 + $0x1d4] sm:$0xf0] }
  0x3c   :  { %952 = vmatpush.bf16.msra.mxu2 %v1581_v34  ;;  %v1677_v23 = vor.u32 %v1925_v22, %v1676_v21  ;;  %v1381_v27 = vor.u32 %v1849_v24, %v1378_v25  ;;  %v1922_v34 = vld [vmem:[#allocation7 + $0x260] sm:$0xf0]  ;;  %v1738_v52 = vld [vmem:[#allocation7 + $0x2f4] sm:$0xf0]  ;;  %v1474_v55 = vld [vmem:[#allocation7 + $0xe4] sm:$0xf0] }
  0x3d   :  { %973 = vmatpush.bf16.msra.mxu0 %v1453_v42  ;;  %v1876_v42 = vld [vmem:[#allocation7 + $0xf4] sm:$0xf]  ;;  %v1582_v58 = vld [vmem:[#allocation7 + $0x1bc] sm:$0xf0]  ;;  %v1870_v62 = vld [vmem:[#allocation7 + $0xc4] sm:$0xf] }
  0x3e   :  { %v1489_v44 = vor.u32 %v1876_v42, %v1486_v43  ;;  %v1936_v59 = vld [vmem:[#allocation7 + $0x2d4] sm:$0xf]  ;;  %v1462_v63 = vld [vmem:[#allocation7 + $0xcc] sm:$0xf0]  ;;  %v1570_v2 = vld [vmem:[#allocation7 + $0x1a4] sm:$0xf0] }
  0x3f   :  { %940 = vmatpush.bf16.msra.mxu1 %v1473_v33  ;;  %v1664_v33 = vld [vmem:[#allocation7 + $0x258] sm:$0xf]  ;;  %v1933_v3 = vld [vmem:[#allocation7 + $0x2bc] sm:$0xf]  ;;  %v1714_v7 = vld [vmem:[#allocation7 + $0x2c4] sm:$0xf0] }
  0x40   :  { %953 = vmatpush.bf16.msra.mxu2 %v1569_v47  ;;  %v1665_v35 = vor.u32 %v1922_v34, %v1664_v33  ;;  %v1894_v9 = vld [vmem:[#allocation7 + $0x184] sm:$0xf]  ;;  %v1558_v10 = vld [vmem:[#allocation7 + $0x18c] sm:$0xf0]  ;;  %v1927_v16 = vld [vmem:[#allocation7 + $0x28c] sm:$0xf] }
  0x41   :  { %974 = vmatpush.bf16.msra.mxu0 %v1441_v48  ;;  %v1903_v48 = vld [vmem:[#allocation7 + $0x1cc] sm:$0xf]  ;;  %v1561_v12 = vor.u32 %v1894_v9, %v1558_v10  ;;  %v1702_v13 = vld [vmem:[#allocation7 + $0x2ac] sm:$0xf0]  ;;  %v1924_v22 = vld [vmem:[#allocation7 + $0x274] sm:$0xf] }
  0x42   :  { %1361 = vmatmul.msk.bf16.vlgmr.msra.gmra.mxu3 %vm195_vm0, %v2182_v5  ;;  %v1700_v5 = vld [vmem:[#allocation7 + $0x2a0] sm:$0xf]  ;;  %v1597_v50 = vor.u32 %v1903_v48, %v1594_v49  ;;  %v2212_v18 = vld [vmem:[%s2246_s4] sm:$0xf]  ;;  %v1869_v31 = vld [vmem:[#allocation7 + $0xb8] sm:$0xf0] }
  0x43   :  { %941 = vmatpush.bf16.msra.mxu1 %v1461_v45  ;;  %v1701_v0 = vor.u32 %v1931_v61, %v1700_v5  ;;  %v1652_v45 = vld [vmem:[#allocation7 + $0x240] sm:$0xf]  ;;  %v253_v21 = vperm.slane %v2212_v18, 0  ;;  %v1666_v33 = vld [vmem:[#allocation7 + $0x264] sm:$0xf0]  ;;  %s1326_s20 = sshll.u32 %s2251_s9, 4  ;;  %s1327_s20 = int_to_ptr.hbm [resolvable:$true] %s1326_s20 }
  0x44   :  { %954 = vmatpush.bf16.msra.mxu2 %v1557_v60  ;;  %v1726_v60 = vld [vmem:[#allocation7 + $0x2dc] sm:$0xf0]  ;;  %v1444_v37 = vld [vmem:[#allocation7 + $0x98] sm:$0xf]  ;;  %v1918_v40 = vld [vmem:[#allocation7 + $0x244] sm:$0xf] }
  0x45   :  { %975 = vmatpush.bf16.msra.mxu0 %v1429_v51  ;;  %963 = vmatpush.bf16.msrb.mxu3 %v1701_v0  ;;  %v1939_v51 = vld [vmem:[#allocation7 + $0x2ec] sm:$0xf]  ;;  %v1729_v61 = vor.u32 %v1936_v59, %v1726_v60  ;;  %v1465_v0 = vor.u32 %v1870_v62, %v1462_v63  ;;  %v1432_v49 = vld [vmem:[#allocation7 + $0x80] sm:$0xf]  ;;  %v255_v59 = vperm.slane %v2212_v18, 2 }
  0x46   :  { %v1741_v53 = vor.u32 %v1939_v51, %v1738_v52  ;;  %v1552_v52 = vld [vmem:[#allocation7 + $0x170] sm:$0xf]  ;;  %v1540_v62 = vld [vmem:[#allocation7 + $0x158] sm:$0xf]  ;;  %v1890_v63 = vld [vmem:[#allocation7 + $0x160] sm:$0xf0] }
  0x47   :  { %986 = vmatpush.bf16.msrb.mxu1 %v1549_v46  ;;  %v1919_v46 = vld [vmem:[#allocation7 + $0x248] sm:$0xf0]  ;;  %v1917_v9 = vld [vmem:[#allocation7 + $0x238] sm:$0xf0]  ;;  %v1528_v10 = vld [vmem:[#allocation7 + $0x140] sm:$0xf] }
  0x48   :  { %999 = vmatpush.bf16.msrb.mxu2 %v1645_v6  ;;  %v1653_v47 = vor.u32 %v1919_v46, %v1652_v45  ;;  %v254_v45 = vperm.slane %v2212_v18, 1 }
  0x49   :  { %976 = vmatpush.bf16.msra.mxu0 %v1417_v54  ;;  %964 = vmatpush.bf16.msrb.mxu3 %v1689_v11  ;;  %v1873_v54 = vld [vmem:[#allocation7 + $0xdc] sm:$0xf]  ;;  %v1930_v11 = vld [vmem:[#allocation7 + $0x2a4] sm:$0xf] }
  0x4a   :  { %v1477_v56 = vor.u32 %v1873_v54, %v1474_v55  ;;  %v1705_v14 = vor.u32 %v1930_v11, %v1702_v13  ;;  %v1887_v11 = vld [vmem:[#allocation7 + $0x148] sm:$0xf0] }
  0x4b   :  { %987 = vmatpush.bf16.msrb.mxu1 %v1537_v57  ;;  %v1900_v57 = vld [vmem:[#allocation7 + $0x1b4] sm:$0xf] }
  0x4c   :  { %1000 = vmatpush.bf16.msrb.mxu2 %v1633_v17  ;;  %v1585_v5 = vor.u32 %v1900_v57, %v1582_v58  ;;  %v1690_v17 = vld [vmem:[#allocation7 + $0x294] sm:$0xf0]  ;;  %v1860_v57 = vld [vmem:[#allocation7 + $0x70] sm:$0xf0] }
  0x4d   :  { %977 = vmatpush.bf16.msra.mxu0 %v1405_v1  ;;  %965 = vmatpush.bf16.msrb.mxu3 %v1677_v23  ;;  %v1897_v1 = vld [vmem:[#allocation7 + $0x19c] sm:$0xf]  ;;  %v1693_v19 = vor.u32 %v1927_v16, %v1690_v17  ;;  %v1678_v23 = vld [vmem:[#allocation7 + $0x27c] sm:$0xf0]  ;;  %v1854_v16 = vld [vmem:[#allocation7 + $0x40] sm:$0xf0] }
  0x4e   :  { %v1573_v6 = vor.u32 %v1897_v1, %v1570_v2  ;;  %v1681_v25 = vor.u32 %v1924_v22, %v1678_v23  ;;  %v1914_v22 = vld [vmem:[#allocation7 + $0x220] sm:$0xf0] }
  0x4f   :  { %988 = vmatpush.bf16.msrb.mxu1 %v1525_v8  ;;  %v1717_v8 = vor.u32 %v1933_v3, %v1714_v7  ;;  %v1408_v3 = vld [vmem:[#allocation7 + $0x50] sm:$0xf]  ;;  %v1541_v7 = vor.u32 %v1890_v63, %v1540_v62  ;;  %v1938_v62 = vld [vmem:[#allocation7 + $0x2e0] sm:$0xf0] }
  0x50   :  { %1001 = vmatpush.bf16.msrb.mxu2 %v1621_v29  ;;  %v1456_v29 = vld [vmem:[#allocation7 + $0xb0] sm:$0xf] }
  0x51   :  { %978 = vmatpush.bf16.msra.mxu0 %v1393_v15  ;;  %966 = vmatpush.bf16.msrb.mxu3 %v1665_v35  ;;  %v1457_v36 = vor.u32 %v1869_v31, %v1456_v29  ;;  %v1851_v29 = vld [vmem:[#allocation7 + $0x28] sm:$0xf0]  ;;  %v1624_v31 = vld [vmem:[#allocation7 + $0x200] sm:$0xf] }
  0x53   :  { %989 = vmatpush.bf16.msrb.mxu1 %v1513_v20 }
  0x54   :  { %1002 = vmatpush.bf16.msrb.mxu2 %v1609_v41  ;;  %v1654_v41 = vld [vmem:[#allocation7 + $0x24c] sm:$0xf0] }
  0x55   :  { %979 = vmatpush.bf16.msra.mxu0 %v1381_v27  ;;  %967 = vmatpush.bf16.msrb.mxu3 %v1653_v47  ;;  %v1657_v43 = vor.u32 %v1918_v40, %v1654_v41  ;;  %v1848_v40 = vld [vmem:[#allocation7 + $0x10] sm:$0xf0] }
  0x57   :  { %990 = vmatpush.bf16.msrb.mxu1 %v1501_v32  ;;  %v1921_v32 = vld [vmem:[#allocation7 + $0x25c] sm:$0xf] }
  0x58   :  { %1003 = vmatpush.bf16.msrb.mxu2 %v1597_v50  ;;  %v1669_v34 = vor.u32 %v1921_v32, %v1666_v33  ;;  %v1863_v50 = vld [vmem:[#allocation7 + $0x88] sm:$0xf0]  ;;  %v1504_v33 = vld [vmem:[#allocation7 + $0x110] sm:$0xf] }
  0x59   :  { %980 = vmatpush.bf16.msra.mxu0 %v1369_v39  ;;  %1012 = vmatpush.bf16.msra.mxu3 %v1741_v53  ;;  %v1866_v39 = vld [vmem:[#allocation7 + $0xa0] sm:$0xf0]  ;;  %v1893_v53 = vld [vmem:[#allocation7 + $0x178] sm:$0xf0]  ;;  %v1433_v54 = vor.u32 %v1863_v50, %v1432_v49  ;;  %v1911_v32 = vld [vmem:[#allocation7 + $0x208] sm:$0xf0] }
  0x5a   :  { %v1445_v47 = vor.u32 %v1866_v39, %v1444_v37  ;;  %v1625_v37 = vor.u32 %v1911_v32, %v1624_v31  ;;  %v1372_v39 = vld [vmem:[#allocation7 + $0x8] sm:$0xf]  ;;  %v1920_v32 = vld [vmem:[#allocation7 + $0x250] sm:$0xf0] }
  0x5b   :  { %991 = vmatpush.bf16.msrb.mxu1 %v1489_v44  ;;  %v1660_v31 = vld [vmem:[#allocation7 + $0x248] sm:$0xf] }
  0x5c   :  { %1004 = vmatpush.bf16.msrb.mxu2 %v1585_v5  ;;  %v1553_v5 = vor.u32 %v1893_v53, %v1552_v52  ;;  %v1600_v53 = vld [vmem:[#allocation7 + $0x1d0] sm:$0xf] }
  0x5d   :  { %1013 = vmatpush.bf16.msra.mxu3 %v1729_v61 }
  0x5f   :  { %992 = vmatpush.bf16.msrb.mxu1 %v1477_v56  ;;  %v1420_v56 = vld [vmem:[#allocation7 + $0x68] sm:$0xf] }
  0x60   :  { %1005 = vmatpush.bf16.msrb.mxu2 %v1573_v6  ;;  %v1421_v1 = vor.u32 %v1860_v57, %v1420_v56  ;;  %v1480_v56 = vld [vmem:[#allocation7 + $0xe0] sm:$0xf]  ;;  %v1875_v57 = vld [vmem:[#allocation7 + $0xe8] sm:$0xf0] }
  0x61   :  { %1014 = vmatpush.bf16.msra.mxu3 %v1717_v8  ;;  %v1648_v8 = vld [vmem:[#allocation7 + $0x230] sm:$0xf] }
  0x63   :  { %993 = vmatpush.bf16.msrb.mxu1 %v1465_v0 }
  0x64   :  { %1006 = vmatpush.bf16.msrb.mxu2 %v1561_v12 }
  0x65   :  { %1015 = vmatpush.bf16.msra.mxu3 %v1705_v14  ;;  %v1649_v14 = vor.u32 %v1917_v9, %v1648_v8  ;;  %v1720_v8 = vld [vmem:[#allocation7 + $0x2c0] sm:$0xf]  ;;  %v1935_v9 = vld [vmem:[#allocation7 + $0x2c8] sm:$0xf0] }
  0x69   :  { %1016 = vmatpush.bf16.msra.mxu3 %v1693_v19 }
  0x6d   :  { %1017 = vmatpush.bf16.msra.mxu3 %v1681_v25  ;;  %v1884_v25 = vld [vmem:[#allocation7 + $0x130] sm:$0xf0] }
  0x71   :  { %1018 = vmatpush.bf16.msra.mxu3 %v1669_v34  ;;  %v1881_v34 = vld [vmem:[#allocation7 + $0x118] sm:$0xf0] }
  0x75   :  { %1019 = vmatpush.bf16.msra.mxu3 %v1657_v43  ;;  %v1612_v43 = vld [vmem:[#allocation7 + $0x1e8] sm:$0xf] }
  0x99   :  { %v208_v4 = vpop.f32.mrf.mxu0 }
  0x9f   :  { %v145_v15 = vpop.f32.mrf.mxu1 }
  0xa1   :  { %v210_v20 = vpop.f32.mrf.mxu0 }
  0xa2   :  { %v1529_v20 = vor.u32 %v1887_v11, %v1528_v10  ;;  %v1576_v11 = vld [vmem:[#allocation7 + $0x1a0] sm:$0xf] }
  0xa5   :  { %v132_v24 = vpop.f32.mrf.mxu3 }
  0xa6   :  { %v209_v27 = vadd.f32 %v208_v4, %v132_v24  ;;  %v1857_v4 = vld [vmem:[#allocation7 + $0x58] sm:$0xf0]  ;;  %v1516_v24 = vld [vmem:[#allocation7 + $0x128] sm:$0xf] }
  0xa7   :  { %v147_v28 = vpop.f32.mrf.mxu1  ;;  %v1409_v13 = vor.u32 %v1857_v4, %v1408_v3  ;;  %v1468_v3 = vld [vmem:[#allocation7 + $0xc8] sm:$0xf]  ;;  %v1872_v4 = vld [vmem:[#allocation7 + $0xd0] sm:$0xf0] }
  0xa8   :  { %v158_v26 = vpop.f32.mrf.mxu2  ;;  %v261_v30 = vadd.f32 %v253_v21, %v209_v27  ;;  %v1636_v21 = vld [vmem:[#allocation7 + $0x218] sm:$0xf]  ;;  %v1384_v28 = vld [vmem:[#allocation7 + $0x20] sm:$0xf]  ;;  %v1469_v10 = vor.u32 %v1872_v4, %v1468_v3 }
  0xa9   :  { %v1637_v27 = vor.u32 %v1914_v22, %v1636_v21  ;;  %v1696_v22 = vld [vmem:[#allocation7 + $0x290] sm:$0xf] }
  0xaa   :  { %v265_v35 = vmax.f32 %v261_v30, 0.0  ;;  %v1517_v30 = vor.u32 %v1884_v25, %v1516_v24  ;;  %v1684_v25 = vld [vmem:[#allocation7 + $0x278] sm:$0xf] }
  0xac   :  { %v2215_v38 = vpack.c.bf16 %v265_v35, %v265_v35  ;;  %v1385_v35 = vor.u32 %v1851_v29, %v1384_v28  ;;  %v1672_v28 = vld [vmem:[#allocation7 + $0x260] sm:$0xf]  ;;  %v1923_v29 = vld [vmem:[#allocation7 + $0x268] sm:$0xf0] }
  0xad   :  { %v134_v42 = vpop.f32.mrf.mxu3 }
  0xae   :  { %929 = vmatmul.bf16.vlgmr.msrb.gmra.mxu0 %v2215_v38  ;;  %v1505_v42 = vor.u32 %v1881_v34, %v1504_v33  ;;  %v1949_v33 = vld [vmem:[#allocation8 + $0x38] sm:$0xff]  ;;  %v1948_v34 = vld [vmem:[#allocation8 + $0x30] sm:$0xff] }
  0xaf   :  { %v221_v46 = vpop.f32.mrf.mxu1  ;;  %1025 = vmatpush.bf16.msrb.mxu0 %v1457_v36  ;;  %v256_v36 = vperm.slane %v2212_v18, 3  ;;  %v1941_v18 = vld [vmem:[#allocation7 + $0x2f8] sm:$0xf0] }
  0xb0   :  { %v160_v44 = vpop.f32.mrf.mxu2  ;;  %v222_v48 = vadd.f32 %v221_v46, %v145_v15  ;;  %v1396_v15 = vld [vmem:[#allocation7 + $0x38] sm:$0xf] }
  0xb1   :  { %v1908_v44 = vld [vmem:[#allocation7 + $0x1f0] sm:$0xf0]  ;;  %v1492_v46 = vld [vmem:[#allocation7 + $0xf8] sm:$0xf] }
  0xb2   :  { %v262_v51 = vadd.f32 %v254_v45, %v222_v48  ;;  %v1373_v48 = vor.u32 %v1848_v40, %v1372_v39  ;;  %v1613_v50 = vor.u32 %v1908_v44, %v1612_v43  ;;  %v1944_v40 = vld [vmem:[#allocation8 + $0x10] sm:$0xff]  ;;  %v1955_v43 = vld [vmem:[#allocation8 + $0x68] sm:$0xff] }
  0xb3   :  { %1026 = vmatpush.bf16.msrb.mxu0 %v1445_v47  ;;  %v1878_v47 = vld [vmem:[#allocation7 + $0x100] sm:$0xf0] }
  0xb4   :  { %v266_v55 = vmax.f32 %v262_v51, 0.0  ;;  %v1744_v51 = vld [vmem:[#allocation7 + $0x2f0] sm:$0xf]  ;;  %v1493_v52 = vor.u32 %v1878_v47, %v1492_v46  ;;  %v1954_v46 = vld [vmem:[#allocation8 + $0x60] sm:$0xff] }
  0xb5   :  { %v171_v58 = vpop.f32.mrf.mxu3 }
  0xb6   :  { %v2220_v60 = vpack.c.bf16 %v266_v55, %v266_v55 }
  0xb7   :  { %1027 = vmatpush.bf16.msrb.mxu0 %v1433_v54  ;;  %v223_v2 = vpop.f32.mrf.mxu1  ;;  %v1905_v54 = vld [vmem:[#allocation7 + $0x1d8] sm:$0xf0] }
  0xb8   :  { %v234_v61 = vpop.f32.mrf.mxu2  ;;  %942 = vmatmul.bf16.vlgmr.msra.gmra.mxu1 %v2220_v60  ;;  %v1902_v2 = vld [vmem:[#allocation7 + $0x1c0] sm:$0xf0] }
  0xb9   :  { %v235_v0 = vadd.f32 %v234_v61, %v158_v26  ;;  %1038 = vmatpush.bf16.msra.mxu1 %v1553_v5  ;;  %v1397_v26 = vor.u32 %v1854_v16, %v1396_v15  ;;  %v1601_v5 = vor.u32 %v1905_v54, %v1600_v53  ;;  %v1732_v61 = vld [vmem:[#allocation7 + $0x2d8] sm:$0xf]  ;;  %v1708_v15 = vld [vmem:[#allocation7 + $0x2a8] sm:$0xf] }
  0xba   :  { %v1564_v16 = vld [vmem:[#allocation7 + $0x188] sm:$0xf] }
  0xbb   :  { %v263_v6 = vadd.f32 %v255_v59, %v235_v0  ;;  %1028 = vmatpush.bf16.msrb.mxu0 %v1421_v1  ;;  %v1481_v0 = vor.u32 %v1875_v57, %v1480_v56  ;;  %v1588_v1 = vld [vmem:[#allocation7 + $0x1b8] sm:$0xf]  ;;  %v1951_v53 = vld [vmem:[#allocation8 + $0x48] sm:$0xff]  ;;  %v1950_v57 = vld [vmem:[#allocation8 + $0x40] sm:$0xff] }
  0xbc   :  { %v1963_v54 = vld [vmem:[#allocation8 + $0xa8] sm:$0xff] }
  0xbd   :  { %v267_v12 = vmax.f32 %v263_v6, 0.0  ;;  %v173_v19 = vpop.f32.mrf.mxu3  ;;  %1039 = vmatpush.bf16.msra.mxu1 %v1541_v7  ;;  %v1733_v6 = vor.u32 %v1938_v62, %v1732_v61  ;;  %v1589_v7 = vor.u32 %v1902_v2, %v1588_v1  ;;  %v1961_v62 = vld [vmem:[#allocation8 + $0x98] sm:$0xff] }
  0xbe   :  { %981 = vmatmul.bf16.vlgmr.msra.gmra.mxu0 %v2215_v38  ;;  %v1896_v19 = vld [vmem:[#allocation7 + $0x190] sm:$0xf0] }
  0xbf   :  { %v2223_v17 = vpack.c.bf16 %v267_v12, %v267_v12  ;;  %1029 = vmatpush.bf16.msrb.mxu0 %v1409_v13  ;;  %v1899_v12 = vld [vmem:[#allocation7 + $0x1a8] sm:$0xf0]  ;;  %v1721_v13 = vor.u32 %v1935_v9, %v1720_v8  ;;  %v1565_v21 = vor.u32 %v1896_v19, %v1564_v16 }
  0xc0   :  { %v236_v23 = vpop.f32.mrf.mxu2 }
  0xc1   :  { %955 = vmatmul.bf16.vlgmr.msra.gmra.mxu2 %v2223_v17  ;;  %1040 = vmatpush.bf16.msra.mxu1 %v1529_v20  ;;  %v1929_v23 = vld [vmem:[#allocation7 + $0x298] sm:$0xf0] }
  0xc2   :  { %1051 = vmatpush.bf16.msra.mxu2 %v1649_v14  ;;  %v1577_v14 = vor.u32 %v1899_v12, %v1576_v11  ;;  %v1697_v24 = vor.u32 %v1929_v23, %v1696_v22 }
  0xc3   :  { %1030 = vmatpush.bf16.msrb.mxu0 %v1397_v26  ;;  %v1926_v26 = vld [vmem:[#allocation7 + $0x280] sm:$0xf0] }
  0xc5   :  { %v247_v41 = vpop.f32.mrf.mxu3  ;;  %1041 = vmatpush.bf16.msra.mxu1 %v1517_v30  ;;  %v1673_v30 = vor.u32 %v1923_v29, %v1672_v28 }
  0xc6   :  { %1052 = vmatpush.bf16.msra.mxu2 %v1637_v27  ;;  %v248_v45 = vadd.f32 %v247_v41, %v171_v58  ;;  %v1745_v58 = vor.u32 %v1941_v18, %v1744_v51  ;;  %v1685_v27 = vor.u32 %v1926_v26, %v1684_v25  ;;  %v1956_v41 = vld [vmem:[#allocation8 + $0x70] sm:$0xff] }
  0xc7   :  { %1031 = vmatpush.bf16.msrb.mxu0 %v1385_v35  ;;  %v1947_v35 = vld [vmem:[#allocation8 + $0x28] sm:$0xff]  ;;  %v1952_v51 = vld [vmem:[#allocation8 + $0x50] sm:$0xff] }
  0xc8   :  { %v264_v49 = vadd.f32 %v256_v36, %v248_v45  ;;  %994 = vmatmul.bf16.vlgmr.msrb.gmra.mxu1 %v2220_v60  ;;  %v1946_v36 = vld [vmem:[#allocation8 + $0x20] sm:$0xff]  ;;  %v1964_v18 = vld [vmem:[#allocation8 + $0xb0] sm:$0xff] }
  0xc9   :  { %1042 = vmatpush.bf16.msra.mxu1 %v1505_v42  ;;  %v1943_v42 = vld [vmem:[#allocation8 + $0x8] sm:$0xff]  ;;  %v1942_v45 = vld [vmem:[#allocation8] sm:$0xff] }
  0xca   :  { %1053 = vmatpush.bf16.msra.mxu2 %v1625_v37  ;;  %v268_v55 = vmax.f32 %v264_v49, 0.0  ;;  %v1957_v37 = vld [vmem:[#allocation8 + $0x78] sm:$0xff] }
  0xcb   :  { %1032 = vmatpush.bf16.msrb.mxu0 %v1373_v48  ;;  %v1953_v48 = vld [vmem:[#allocation8 + $0x58] sm:$0xff] }
  0xcc   :  { %v272_v59 = vpack.c.bf16 %v268_v55, %v268_v55  ;;  %v1965_v49 = vld [vmem:[#allocation8 + $0xb8] sm:$0xff] }
  0xcd   :  { %v249_v63 = vpop.f32.mrf.mxu3  ;;  %1043 = vmatpush.bf16.msra.mxu1 %v1493_v52 }
  0xce   :  { %1054 = vmatpush.bf16.msra.mxu2 %v1613_v50  ;;  %968 = vmatmul.bf16.vlgmr.msrb.gmra.mxu3 %v272_v59 }
  0xcf   :  { %1033 = vmatmul.bf16.vlgmr.msrb.gmra.mxu0 %v2215_v38  ;;  %1064 = vmatpush.bf16.msrb.mxu3 %v1745_v58  ;;  %v1932_v38 = vld [vmem:[#allocation7 + $0x2b0] sm:$0xf0]  ;;  %v1962_v58 = vld [vmem:[#allocation8 + $0xa0] sm:$0xff] }
  0xd0   :  { %v1709_v20 = vor.u32 %v1932_v38, %v1708_v15  ;;  %1279 = vmatpush.bf16.msra.mxu0 %v1949_v33 }
  0xd1   :  { %1007 = vmatmul.bf16.vlgmr.msrb.gmra.mxu2 %v2223_v17  ;;  %1044 = vmatpush.bf16.msra.mxu1 %v1481_v0  ;;  %v1960_v0 = vld [vmem:[#allocation8 + $0x90] sm:$0xff] }
  0xd2   :  { %1055 = vmatpush.bf16.msra.mxu2 %v1601_v5 }
  0xd3   :  { %1065 = vmatpush.bf16.msrb.mxu3 %v1733_v6 }
  0xd4   :  { %1280 = vmatpush.bf16.msra.mxu0 %v1948_v34 }
  0xd5   :  { %1045 = vmatpush.bf16.msra.mxu1 %v1469_v10 }
  0xd6   :  { %1056 = vmatpush.bf16.msra.mxu2 %v1589_v7  ;;  %v1959_v7 = vld [vmem:[#allocation8 + $0x88] sm:$0xff] }
  0xd7   :  { %1066 = vmatpush.bf16.msrb.mxu3 %v1721_v13  ;;  %v1958_v13 = vld [vmem:[#allocation8 + $0x80] sm:$0xff] }
  0xd8   :  { %1046 = vmatmul.bf16.vlgmr.msra.gmra.mxu1 %v2220_v60  ;;  %v1661_v60 = vor.u32 %v1920_v32, %v1660_v31  ;;  %1281 = vmatpush.bf16.msra.mxu0 %v1947_v35 }
  0xd9   :  { %1292 = vmatpush.bf16.msrb.mxu1 %v1957_v37 }
  0xda   :  { %1057 = vmatpush.bf16.msra.mxu2 %v1577_v14 }
  0xdb   :  { %1067 = vmatpush.bf16.msrb.mxu3 %v1709_v20 }
  0xdc   :  { %1282 = vmatpush.bf16.msra.mxu0 %v1946_v36 }
  0xdd   :  { %1293 = vmatpush.bf16.msrb.mxu1 %v1956_v41 }
  0xde   :  { %1058 = vmatpush.bf16.msra.mxu2 %v1565_v21  ;;  %1020 = vmatmul.bf16.vlgmr.msra.gmra.mxu3 %v272_v59 }
  0xdf   :  { %1068 = vmatpush.bf16.msrb.mxu3 %v1697_v24 }
  0xe1   :  { %1059 = vmatmul.bf16.vlgmr.msra.gmra.mxu2 %v2223_v17  ;;  %v1945_v17 = vld [vmem:[#allocation8 + $0x18] sm:$0xff]  ;;  %1294 = vmatpush.bf16.msrb.mxu1 %v1955_v43  ;;  %v1977_v43 = vld [vmem:[%s2250_s8] ss:$0 sm:$0xff] }
  0xe2   :  { %1283 = vmatpush.bf16.msra.mxu0 %v1945_v17  ;;  %1305 = vmatpush.bf16.msrb.mxu2 %v1965_v49 }
  0xe3   :  { %1069 = vmatpush.bf16.msrb.mxu3 %v1685_v27 }
  0xe5   :  { %1295 = vmatpush.bf16.msrb.mxu1 %v1954_v46 }
  0xe6   :  { %1284 = vmatpush.bf16.msra.mxu0 %v1944_v40  ;;  %1306 = vmatpush.bf16.msrb.mxu2 %v1964_v18 }
  0xe7   :  { %1070 = vmatpush.bf16.msrb.mxu3 %v1673_v30 }
  0xe9   :  { %1296 = vmatpush.bf16.msrb.mxu1 %v1953_v48 }
  0xea   :  { %1285 = vmatpush.bf16.msra.mxu0 %v1943_v42  ;;  %1307 = vmatpush.bf16.msrb.mxu2 %v1963_v54 }
  0xeb   :  { %1071 = vmatpush.bf16.msrb.mxu3 %v1661_v60 }
  0xed   :  { %1297 = vmatpush.bf16.msrb.mxu1 %v1952_v51 }
  0xee   :  { %1072 = vmatmul.bf16.vlgmr.msrb.gmra.mxu3 %v272_v59  ;;  %1286 = vmatpush.bf16.msra.mxu0 %v1942_v45  ;;  %v401_v59 = vld [vmem:[%s2248_s6] sm:$0x7] }
  0xef   :  { %1308 = vmatpush.bf16.msrb.mxu2 %v1962_v58  ;;  %v403_v61 = vperm.slane %v401_v59, 0  ;;  %v404_v38 = vperm.slane %v401_v59, 1  ;;  %v405_v29 = vperm.slane %v401_v59, 2 }
  0xf1   :  { %1298 = vmatpush.bf16.msrb.mxu1 %v1951_v53 }
  0xf3   :  { %1309 = vmatpush.bf16.msrb.mxu2 %v1961_v62 }
  0xf5   :  { %1299 = vmatpush.bf16.msrb.mxu1 %v1950_v57 }
  0xf7   :  { %1310 = vmatpush.bf16.msrb.mxu2 %v1960_v0 }
  0xfb   :  { %1311 = vmatpush.bf16.msrb.mxu2 %v1959_v7 }
  0xff   :  { %1312 = vmatpush.bf16.msrb.mxu2 %v1958_v13 }
 0x12b   :  { %v930_v39 = vpop.f32.mrf.mxu0 }
 0x12c   :  { %v931_v2 = vadd.f32 %v930_v39, %v403_v61 }
 0x133   :  { %v932_v44 = vpop.f32.mrf.mxu0 }
 0x135   :  { %v943_v47 = vpop.f32.mrf.mxu1 }
 0x136   :  { %v944_v4 = vadd.f32 %v943_v47, %v931_v2 }
 0x13b   :  { %v982_v50 = vpop.f32.mrf.mxu0 }
 0x13c   :  { %v983_v20 = vadd.f32 %v982_v50, %v404_v38 }
 0x13d   :  { %v945_v52 = vpop.f32.mrf.mxu1 }
 0x143   :  { %v984_v56 = vpop.f32.mrf.mxu0 }
 0x144   :  { %v956_v55 = vpop.f32.mrf.mxu2 }
 0x145   :  { %v995_v5 = vpop.f32.mrf.mxu1  ;;  %v957_v6 = vadd.f32 %v956_v55, %v944_v4 }
 0x146   :  { %v996_v22 = vadd.f32 %v995_v5, %v983_v20 }
 0x14c   :  { %v958_v63 = vpop.f32.mrf.mxu2  ;;  %v1034_v1 = vpop.f32.mrf.mxu0 }
 0x14d   :  { %v997_v3 = vpop.f32.mrf.mxu1  ;;  %v1035_v32 = vadd.f32 %v1034_v1, %v405_v29 }
 0x151   :  { %v969_v8 = vpop.f32.mrf.mxu3 }
 0x152   :  { %v970_v9 = vadd.f32 %v969_v8, %v957_v6 }
 0x154   :  { %v1008_v10 = vpop.f32.mrf.mxu2  ;;  %v1036_v11 = vpop.f32.mrf.mxu0  ;;  %v1077_v12 = vmax.f32 %v970_v9, 0.0 }
 0x155   :  { %v1047_v14 = vpop.f32.mrf.mxu1  ;;  %v1009_v23 = vadd.f32 %v1008_v10, %v996_v22 }
 0x156   :  { %v1080_v15 = vpack.c.bf16 %v1077_v12, %v1077_v12  ;;  %v1048_v60 = vadd.f32 %v1047_v14, %v1035_v32 }
 0x158   :  { %1287 = vmatmul.bf16.vlgmr.msra.gmra.mxu0 %v1080_v15 }
 0x159   :  { %v971_v16 = vpop.f32.mrf.mxu3 }
 0x15c   :  { %v1010_v19 = vpop.f32.mrf.mxu2 }
 0x15d   :  { %v1049_v21 = vpop.f32.mrf.mxu1 }
 0x161   :  { %v1021_v24 = vpop.f32.mrf.mxu3 }
 0x162   :  { %v1022_v25 = vadd.f32 %v1021_v24, %v1009_v23 }
 0x164   :  { %v1060_v26 = vpop.f32.mrf.mxu2  ;;  %v1078_v27 = vmax.f32 %v1022_v25, 0.0 }
 0x165   :  { %v1061_v33 = vadd.f32 %v1060_v26, %v1048_v60 }
 0x166   :  { %v1081_v28 = vpack.c.bf16 %v1078_v27, %v1078_v27 }
 0x168   :  { %1300 = vmatmul.bf16.vlgmr.msrb.gmra.mxu1 %v1081_v28 }
 0x169   :  { %v1023_v30 = vpop.f32.mrf.mxu3 }
 0x16c   :  { %v1062_v31 = vpop.f32.mrf.mxu2 }
 0x171   :  { %v1073_v34 = vpop.f32.mrf.mxu3 }
 0x172   :  { %v1074_v35 = vadd.f32 %v1073_v34, %v1061_v33 }
 0x174   :  { %v1079_v36 = vmax.f32 %v1074_v35, 0.0 }
 0x176   :  { %v1082_v17 = vpack.c.bf16 %v1079_v36, %v1079_v36 }
 0x178   :  { %1313 = vmatmul.bf16.vlgmr.msrb.gmra.mxu2 %v1082_v17 }
 0x179   :  { %v1075_v37 = vpop.f32.mrf.mxu3 }
 0x1d5   :  { %v1288_v39 = vpop.f32.mrf.mxu0 }
 0x1d6   :  { %v1289_v44 = vadd.f32 %v1977_v43, %v1288_v39 }
 0x1dd   :  { %v1290_v40 = vpop.f32.mrf.mxu0 }
 0x1e5   :  { %v1301_v41 = vpop.f32.mrf.mxu1 }
 0x1e6   :  { %v1302_v45 = vadd.f32 %v1301_v41, %v1289_v44 }
 0x1ed   :  { %v1303_v42 = vpop.f32.mrf.mxu1 }
 0x1fb   :  { %v1314_v46 = vpop.f32.mrf.mxu2 }
 0x1fc   :  { %v1315_v47 = vadd.f32 %v1314_v46, %v1302_v45 }
 0x1fe   :  { %1318 = vst [vmem:[#allocation10] sm:$0xff] %v1315_v47 }
 0x1ff   :  { %1329 = dma.vmem_to_hbm [thread:$0]  %s1325_s17, 128, %s1327_s20, [#allocation4]  }
 0x203   :  { %v1316_v48 = vpop.f32.mrf.mxu2 }
 0x204   :  { %2104 = dma.done.wait [#allocation4], 128  }
 0x205   :  { %2105 = vsyncadd [#allocation4], 4294967168 }
 0x206   :  { %1334 = vsyncpa [#allocation3], 1 }
 0x207   :  { %1335 = vsyncpa [#allocation6], 1 }
 0x208   :  { %1336 = vsyncpa [#allocation9], 1 }
 0x209   :  { %1337 = vsyncpa [#allocation4], 1 }

</bundles_post_ra>
